<compile_context>
chip_gen: v7x
topology: tpu7x:2x2x1
jax: 0.10.0
libtpu: 0.0.40
codegen_flags: <defaults>
</compile_context>

<pallas_src>
import functools

import jax
import jax.numpy as jnp
from jax.experimental import pallas as pl
from jax.experimental.pallas import tpu as pltpu

D_FEATURES = 512  # fixed by nn.Linear(in_features=512, out_features=1)


def _round_up(n: int, m: int) -> int:
    return ((n + m - 1) // m) * m


def _siamese_kernel(w_ref, b_ref, left_ref, right_ref, out_ref):
    # |right - left| : elementwise on the VPU.                     [TB, 512] f32
    dist = jnp.abs(right_ref[...] - left_ref[...])
    # Multiply by the lane-major weight row (broadcast over sublanes), VPU.
    weighted = dist * w_ref[...]                                   # [TB, 512]
    # Row reduction over the lane axis on the XLU.
    logits = jnp.sum(weighted, axis=-1, keepdims=True)             # [TB, 1]
    # Scalar bias read from SMEM.
    logits = logits + b_ref[0]
    # sigmoid(x) = 1 / (1 + exp(-x)): exp on the EUP, approx reciprocal on the EUP.
    sig = pl.reciprocal(1.0 + jnp.exp(-logits), approx=True)
    out_ref[...] = sig.astype(out_ref.dtype)


@functools.partial(jax.jit, static_argnames=("block_b",))
def siamese_forward(left_encoding, right_encoding, weight_row, bias, *, block_b=1024):
    """Pallas forward pass of SiameseNetworkV2.

    Args:
      left_encoding, right_encoding: [B, 512] float32 encodings.
      weight_row: [1, 512] float32 classifier weight (torch layout, NOT transposed).
      bias: [1] float32 classifier bias.
      block_b: batch tile size (1024-2048 is the v7x sweet spot; v5e/v6e can go
        larger but gains past ~2048 are small).

    Returns:
      [B, 1] float32 = sigmoid(|right - left| @ weight_row.T + bias)
    """
    left = left_encoding.astype(jnp.float32)
    right = right_encoding.astype(jnp.float32)
    w_row = weight_row.astype(jnp.float32)
    b = bias.astype(jnp.float32).reshape((1,))

    B, D = left.shape
    assert D == D_FEATURES, f"expected feature dim {D_FEATURES}, got {D}"

    # Batch tile: multiple of 8 (f32 sublane quantum), no over-padding of tiny B.
    tb = _round_up(min(block_b, _round_up(B, 8)), 8)
    b_pad = _round_up(B, tb)
    if b_pad != B:
        pad = ((0, b_pad - B), (0, 0))
        left = jnp.pad(left, pad)
        right = jnp.pad(right, pad)
    num_tiles = b_pad // tb

    out = pl.pallas_call(
        _siamese_kernel,
        out_shape=jax.ShapeDtypeStruct((b_pad, 1), jnp.float32),
        grid=(num_tiles,),
        in_specs=[
            # Weight row: constant index_map -> stays resident in VMEM.
            pl.BlockSpec((1, D), lambda i: (0, 0)),
            # Bias: scalar in SMEM (no per-tile VMEM block / broadcast).
            pl.BlockSpec(memory_space=pltpu.MemorySpace.SMEM),
            # Batch tiles of the two encodings.
            pl.BlockSpec((tb, D), lambda i: (i, 0)),
            pl.BlockSpec((tb, D), lambda i: (i, 0)),
        ],
        out_specs=pl.BlockSpec((tb, 1), lambda i: (i, 0)),
        compiler_params=pltpu.CompilerParams(
            # Independent batch tiles: lets v7x shard the grid over both TCs.
            dimension_semantics=("parallel",),
        ),
        cost_estimate=pl.CostEstimate(
            flops=3 * b_pad * D,                      # sub + abs + mul (+ reduce)
            transcendentals=b_pad,                    # one exp per row
            bytes_accessed=2 * b_pad * D * 4 + b_pad * 4 + D * 4,
        ),
    )(w_row, b, left, right)

    return out[:B]


def init_params(key):
    """Deterministic init mirroring the torch module:
       - classifier.weight: xavier_uniform_ over shape [1, 512]
       - classifier.bias:   torch Linear default U(-1/sqrt(512), 1/sqrt(512))
    """
    k_w, k_b = jax.random.split(key)
    fan_in, fan_out = D_FEATURES, 1
    a = (6.0 / (fan_in + fan_out)) ** 0.5
    weight_row = jax.random.uniform(k_w, (fan_out, fan_in), jnp.float32, -a, a)  # [1, 512]
    bound = 1.0 / (fan_in ** 0.5)
    bias = jax.random.uniform(k_b, (fan_out,), jnp.float32, -bound, bound)       # [1]
    return weight_row, bias


def reference_forward(left, right, weight_row, bias):
    dist = jnp.abs(right - left)
    return jax.nn.sigmoid(dist @ weight_row.T + bias)


if __name__ == "__main__":
    key = jax.random.PRNGKey(0)
    k_params, k_left, k_right = jax.random.split(key, 3)

    weight_row, bias = init_params(k_params)

    # Small demo batch (single tile).
    B = 8
    left = jax.random.normal(k_left, (B, D_FEATURES), jnp.float32)
    right = jax.random.normal(k_right, (B, D_FEATURES), jnp.float32)

    out = jax.block_until_ready(siamese_forward(left, right, weight_row, bias))
    ref = reference_forward(left, right, weight_row, bias)
    assert out.shape == (B, 1)
    # approx reciprocal on the EUP -> allow ~1e-3 slack vs the exact reference.
    assert jnp.allclose(out, ref, atol=2e-3, rtol=2e-3), "mismatch vs reference (B=8)"

    # Exercise the multi-tile + padded path (B not a multiple of the batch tile).
    B2 = 260
    left2 = jax.random.normal(k_left, (B2, D_FEATURES), jnp.float32)
    right2 = jax.random.normal(k_right, (B2, D_FEATURES), jnp.float32)
    out2 = jax.block_until_ready(
        siamese_forward(left2, right2, weight_row, bias, block_b=128))
    ref2 = reference_forward(left2, right2, weight_row, bias)
    assert out2.shape == (B2, 1)
    assert jnp.allclose(out2, ref2, atol=2e-3, rtol=2e-3), "mismatch vs reference (B=260)"

    print("KERNEL_OK")
</pallas_src>

<mosaic_0001>
module attributes {stable_mosaic.version = 11 : i64} {
  func.func @_siamese_kernel(%arg0: i32, %arg1: memref<1x512xf32, #tpu.memory_space<vmem>>, %arg2: memref<1xf32, #tpu.memory_space<smem>>, %arg3: memref<8x512xf32, #tpu.memory_space<vmem>>, %arg4: memref<8x512xf32, #tpu.memory_space<vmem>>, %arg5: memref<8x1xf32, #tpu.memory_space<vmem>>) attributes {dimension_semantics = [#tpu.dimension_semantics<parallel>], iteration_bounds = array<i64: 1>, scalar_prefetch = 0 : i64, scratch_operands = 0 : i64, tpu.core_type = #tpu.core_type<tc>, window_params = [{pipeline_mode = #tpu.pipeline_mode<synchronous>, transform_indices = @transform_0, window_bounds = array<i64: 1, 512>}, {transform_indices = @transform_1, window_bounds = array<i64: 1>}, {transform_indices = @transform_2, window_bounds = array<i64: 8, 512>}, {transform_indices = @transform_3, window_bounds = array<i64: 8, 512>}, {transform_indices = @transform_4, window_bounds = array<i64: 8, 1>}]} {
    %c0 = arith.constant 0 : index
    %c0_0 = arith.constant 0 : index
    %0 = vector.load %arg4[%c0, %c0_0] : memref<8x512xf32, #tpu.memory_space<vmem>>, vector<8x512xf32>
    %c0_1 = arith.constant 0 : index
    %c0_2 = arith.constant 0 : index
    %1 = vector.load %arg3[%c0_1, %c0_2] : memref<8x512xf32, #tpu.memory_space<vmem>>, vector<8x512xf32>
    %2 = arith.subf %0, %1 : vector<8x512xf32>
    %3 = math.absf %2 : vector<8x512xf32>
    %c0_3 = arith.constant 0 : index
    %c0_4 = arith.constant 0 : index
    %4 = vector.load %arg1[%c0_3, %c0_4] : memref<1x512xf32, #tpu.memory_space<vmem>>, vector<1x512xf32>
    %5 = vector.broadcast %4 : vector<1x512xf32> to vector<8x512xf32>
    %6 = arith.mulf %3, %5 : vector<8x512xf32>
    %cst = arith.constant dense<0.000000e+00> : vector<8xf32>
    %7 = vector.multi_reduction <add>, %6, %cst [1] : vector<8x512xf32> to vector<8xf32>
    %8 = vector.shape_cast %7 : vector<8xf32> to vector<8x1xf32>
    %c0_5 = arith.constant 0 : index
    %9 = memref.load %arg2[%c0_5] : memref<1xf32, #tpu.memory_space<smem>>
    %10 = vector.broadcast %9 : f32 to vector<8x1xf32>
    %11 = arith.addf %8, %10 : vector<8x1xf32>
    %cst_6 = arith.constant 0.000000e+00 : f32
    %12 = vector.broadcast %cst_6 : f32 to vector<8x1xf32>
    %13 = arith.subf %12, %11 : vector<8x1xf32>
    %14 = math.exp %13 : vector<8x1xf32>
    %cst_7 = arith.constant 1.000000e+00 : f32
    %15 = vector.broadcast %cst_7 : f32 to vector<8x1xf32>
    %16 = arith.addf %15, %14 : vector<8x1xf32>
    %17 = tpu.reciprocal %16 {approx = true} : vector<8x1xf32> -> vector<8x1xf32>
    %c0_8 = arith.constant 0 : index
    %c0_9 = arith.constant 0 : index
    %18 = vector.load %arg5[%c0_8, %c0_9] : memref<8x1xf32, #tpu.memory_space<vmem>>, vector<8x1xf32>
    tpu.vector_store %arg5[%c0_8, %c0_9], %17 {strides = array<i32>} : memref<8x1xf32, #tpu.memory_space<vmem>>, vector<8x1xf32>,
    return
  }
  func.func @transform_0(%arg0: i32) -> (i32, i32) {
    %c0_i32 = arith.constant 0 : i32
    %c0_i32_0 = arith.constant 0 : i32
    %c0_i32_1 = arith.constant 0 : i32
    return %c0_i32, %c0_i32_0 : i32, i32
  }
  func.func @transform_1(%arg0: i32) -> i32 {
    %c0_i32 = arith.constant 0 : i32
    %c0_i32_0 = arith.constant 0 : i32
    return %c0_i32 : i32
  }
  func.func @transform_2(%arg0: i32) -> (i32, i32) {
    %c0_i32 = arith.constant 0 : i32
    %c0_i32_0 = arith.constant 0 : i32
    return %arg0, %c0_i32 : i32, i32
  }
  func.func @transform_3(%arg0: i32) -> (i32, i32) {
    %c0_i32 = arith.constant 0 : i32
    %c0_i32_0 = arith.constant 0 : i32
    return %arg0, %c0_i32 : i32, i32
  }
  func.func @transform_4(%arg0: i32) -> (i32, i32) {
    %c0_i32 = arith.constant 0 : i32
    %c0_i32_0 = arith.constant 0 : i32
    return %arg0, %c0_i32 : i32, i32
  }
}

</mosaic_0001>

<bundles_post_ra>
// kernel: siamese_forward.1
= control target key start
LH: loop header
LB: loop body
LE: loop exit
PB: predicated region body
PF: predicated region fallthrough
CT: control target
= control target key end

     0   :  { %10 = vsyncpa [#allocation4], 0  ;;  %s219_s0 = inlined_call_operand.vmem [shape: f32[1,512], index: 0, kind: input, shape index: {}]   ;;  %s220_s1 = inlined_call_operand.<no memory space> [shape: f32[1], index: 1, kind: input, shape index: {}]   ;;  %s221_s2 = inlined_call_operand.hbm [shape: f32[8,512], index: 2, kind: input, shape index: {}]   ;;  %s222_s3 = inlined_call_operand.hbm [shape: f32[8,512], index: 3, kind: input, shape index: {}]   ;;  %s223_s4 = inlined_call_operand.vmem [shape: f32[8,1], index: 4, kind: output, shape index: {}]  }
   0x1   :  { %11 = vsyncpa [#allocation6], 0  ;;  %s159_s15 = smov [#allocation3]   ;;  %s160_s17 = smov [#allocation5]  }
   0x2   :  { %s22_s16 = sshll.u32 %s159_s15, 4  ;;  %s32_s18 = sshll.u32 %s160_s17, 4  ;;  %s23_s16 = int_to_ptr.vmem [resolvable:$true] %s22_s16  ;;  %s33_s18 = int_to_ptr.vmem [resolvable:$true] %s32_s18 }
   0x3   :  { %s111_s21 = scalar_lea.hbm %s221_s2, 512 }
   0x4   :  { %p112_p0 = scmp.ne.s32.totalorder %s221_s2, %s111_s21  ;;  %p115_p1 = scmp.lt.u32.totalorder %s111_s21, %s221_s2 }
   0x6   :  { %p117_p2 = pnand %p115_p1, %p112_p0 }
   0x8   :  { %120 = shalt.err (!%p117_p2)
}
   0x9   :  { %s121_s26 = scalar_lea.vmem %s23_s16, 512  ;;  %p126_p4 = scmp.lt.s32.totalorder %s23_s16, %s23_s16 }
   0xa   :  { %p122_p3 = scmp.ne.s32.totalorder %s23_s16, %s121_s26  ;;  %p127_p5 = scmp.lt.s32.totalorder %s121_s26, %s121_s26 }
   0xc   :  { %p128_p6 = por %p127_p5, %p126_p4 }
   0xe   :  { %p129_p7 = pnand %p128_p6, %p122_p3 }
  0x10   :  { %132 = shalt.err (!%p129_p7)
}
  0x11   :  { %25 = dma.hbm_to_vmem [thread:$0]  %s221_s2, 512, %s23_s16, [#allocation4]  }
  0x12   :  { %s133_s5 = scalar_lea.hbm %s222_s3, 512 }
  0x13   :  { %p134_p8 = scmp.ne.s32.totalorder %s222_s3, %s133_s5  ;;  %p137_p9 = scmp.lt.u32.totalorder %s133_s5, %s222_s3 }
  0x15   :  { %p139_p10 = pnand %p137_p9, %p134_p8 }
  0x17   :  { %142 = shalt.err (!%p139_p10)
}
  0x18   :  { %s143_s10 = scalar_lea.vmem %s33_s18, 512  ;;  %p148_p12 = scmp.lt.s32.totalorder %s33_s18, %s33_s18 }
  0x19   :  { %p144_p11 = scmp.ne.s32.totalorder %s33_s18, %s143_s10  ;;  %p149_p13 = scmp.lt.s32.totalorder %s143_s10, %s143_s10 }
  0x1b   :  { %p150_p0 = por %p149_p13, %p148_p12 }
  0x1d   :  { %p151_p1 = pnand %p150_p0, %p144_p11 }
  0x1f   :  { %154 = shalt.err (!%p151_p1)
}
  0x20   :  { %35 = dma.hbm_to_vmem [thread:$0]  %s222_s3, 512, %s33_s18, [#allocation6]  }
  0x21   :  { %155 = dma.done.wait [#allocation4], 512  }
  0x22   :  { %156 = vsyncadd [#allocation4], 4294966784 }
  0x23   :  { %157 = dma.done.wait [#allocation6], 512  }
  0x24   :  { %158 = vsyncadd [#allocation6], 4294966784  ;;  %v60_v0 = vlaneseq  ;;  %v42_v4 = vld [vmem:[#allocation5] sm:$0xff]  ;;  %v43_v5 = vld [vmem:[#allocation5 + $0x8] sm:$0xff]  ;;  %v90_v34 = vstv %s220_s1  ;;  %vm97_vm0 = vcmask 7168  }
  0x25   :  { %v44_v6 = vld [vmem:[#allocation5 + $0x10] sm:$0xff]  ;;  %v45_v9 = vld [vmem:[#allocation5 + $0x18] sm:$0xff]  ;;  %v46_v10 = vld [vmem:[#allocation3] sm:$0xff] }
  0x26   :  { %v61_v1 = vshrl.u32 %v60_v0, 7  ;;  %v47_v11 = vld [vmem:[#allocation3 + $0x8] sm:$0xff]  ;;  %v48_v12 = vld [vmem:[#allocation3 + $0x10] sm:$0xff]  ;;  %v49_v13 = vld [vmem:[#allocation3 + $0x18] sm:$0xff]  ;;  %v50_v14 = vsub.f32 %v42_v4, %v46_v10 }
  0x27   :  { %v51_v15 = vsub.f32 %v43_v5, %v47_v11  ;;  %v58_v16 = vld [vmem:[%s219_s0] sm:$0xf]  ;;  %v52_v17 = vsub.f32 %v44_v6, %v48_v12  ;;  %v53_v18 = vsub.f32 %v45_v9, %v49_v13 }
  0x28   :  { %v62_v2 = vsub.s32 0, %v61_v1  ;;  %v66_v3 = vsub.s32 1, %v61_v1  ;;  %v70_v7 = vsub.s32 2, %v61_v1  ;;  %v74_v8 = vsub.s32 3, %v61_v1 }
  0x29   :  { %v54_v21 = vand.u32 2147483647, %v50_v14  ;;  %v55_v22 = vand.u32 2147483647, %v51_v15  ;;  %v56_v25 = vand.u32 2147483647, %v52_v17 }
  0x2a   :  { %v63_v19 = vrot.slane %v58_v16, %v62_v2  ;;  %v67_v20 = vrot.slane %v58_v16, %v66_v3  ;;  %v71_v23 = vrot.slane %v58_v16, %v70_v7  ;;  %v75_v24 = vrot.slane %v58_v16, %v74_v8 }
  0x2b   :  { %v57_v26 = vand.u32 2147483647, %v53_v18 }
  0x2c   :  { %v80_v27 = vmul.f32 %v63_v19, %v54_v21  ;;  %v81_v28 = vmul.f32 %v67_v20, %v55_v22  ;;  %v82_v29 = vmul.f32 %v71_v23, %v56_v25 }
  0x2d   :  { %v83_v30 = vmul.f32 %v75_v24, %v57_v26 }
  0x2e   :  { %v84_v31 = vadd.f32 %v81_v28, %v80_v27 }
  0x30   :  { %v85_v32 = vadd.f32 %v84_v31, %v82_v29 }
  0x32   :  { %v86_v33 = vadd.f32 %v85_v32, %v83_v30 }
  0x34   :  { %87 = vadd.xlane.f32.xlu0 %v86_v33 }
  0xc1   :  { %v88_v35 = vpop.xlane.xlu0 %87 }
  0xc2   :  { %v91_v36 = vadd.f32 %v90_v34, %v88_v35 }
  0xc4   :  { %v92_v37 = vsub.f32 0.0, %v91_v36 }
  0xc6   :  { %v93_v38 = vmul.f32 1.442695, %v92_v37 }
  0xc8   :  { %107 = vpow2.f32 %v93_v38 }
  0xd2   :  { %v108_v39 = vpop.eup %107 }
  0xd3   :  { %v95_v40 = vadd.f32 1.0, %v108_v39 }
  0xd5   :  { %109 = vrcp.f32 %v95_v40 }
  0xdf   :  { %v110_v41 = vpop.eup %109 }
  0xe0   :  { %98 = vst.msk [vmem:[%s223_s4] sm:$0xff] %vm97_vm0, %v110_v41 }
  0xe1   :  { %103 = vsyncpa [#allocation4], 1 }
  0xe2   :  { %104 = vsyncpa [#allocation6], 1 }

</bundles_post_ra>
